<compile_context>
chip_gen: v6e
topology: v6e:2x2x1
jax: 0.10.0
libtpu: 0.0.40
codegen_flags: <defaults>
</compile_context>

<pallas_src>
import functools

import numpy as np

import jax
import jax.numpy as jnp
from jax.experimental import pallas as pl
from jax.experimental.pallas import tpu as pltpu


def _round_up(x, m):
    return ((x + m - 1) // m) * m


def _double_conv_kernel(x_ref, m_ref, w1_ref, b1_ref, w2_ref, b2_ref, o_ref,
                        *, wp, mi, mo_pad):
    # x_ref : (1, 1, Cin_p, LXT)   flattened padded input slab for this row tile
    # m_ref : (1, 1, Mi)           validity mask (halo rows & wrap cols -> 0)
    # w1_ref: (Cout_p, 9*Cin_p)    conv1 weights, tap-major / channel-minor
    # b1_ref: (Cout_p, 1)
    # w2_ref: (Cout_p, 9*Cout_p)
    # b2_ref: (Cout_p, 1)
    # o_ref : (1, 1, Cout_p, Mo_pad)  lane-dense output slab (Mo_pad % 128 == 0)
    xf = x_ref[0, 0]                                            # (Cin_p, LXT)

    # ---- conv1: im2col along the contraction (sublane) axis --------------
    # 9 contiguous lane-shifted windows of the flat slab -> one MXU matmul
    # with K = 9*Cin_p (instead of 9 matmuls with K = Cin).
    xcat = jnp.concatenate(
        [xf[:, ky * wp + kx: ky * wp + kx + mi]
         for ky in range(3) for kx in range(3)], axis=0)        # (9*Cin_p, Mi)
    acc1 = jnp.dot(w1_ref[...], xcat,
                   preferred_element_type=jnp.float32)          # (Cout_p, Mi)
    # ReLU + bias, then zero the wrap columns and out-of-range halo rows so
    # the intermediate already carries conv2's 'same' zero padding.
    y1 = jnp.maximum(acc1 + b1_ref[...], 0.0) * m_ref[0]        # (Cout_p, Mi)

    # ---- conv2 -------------------------------------------------------------
    # conv2's taps are just lane offsets (ky*wp + kx - 1) into y1; prepend one
    # zero lane and append a zero tail so every shifted window is in bounds.
    mo = mi - 2 * wp                         # flat output length (T * Wp)
    cout_p = y1.shape[0]
    zhead = jnp.zeros((cout_p, 1), jnp.float32)
    ztail = jnp.zeros((cout_p, mo_pad - mo + 1), jnp.float32)
    y1p = jnp.concatenate([zhead, y1, ztail], axis=1)           # (Cout_p, 2*wp+mo_pad+2)
    ycat = jnp.concatenate(
        [y1p[:, ky * wp + kx: ky * wp + kx + mo_pad]
         for ky in range(3) for kx in range(3)], axis=0)        # (9*Cout_p, Mo_pad)
    acc2 = jnp.dot(w2_ref[...], ycat,
                   preferred_element_type=jnp.float32)          # (Cout_p, Mo_pad)
    o_ref[0, 0] = jnp.maximum(acc2 + b2_ref[...], 0.0).astype(o_ref.dtype)


@functools.partial(jax.jit, static_argnames=("tile_h",))
def double_conv(x_nchw, w1_oihw, b1, w2_oihw, b2, *, tile_h=8):
    """x_nchw: (B, Cin, H, W) f32.  Weights in PyTorch OIHW layout."""
    B, Cin, H, W = x_nchw.shape
    Cout = w1_oihw.shape[0]
    if H % tile_h != 0:
        tile_h = H                       # fall back: one row tile per image
    T = tile_h                           # output rows per grid step
    nt = H // T
    Wp = W + 2                           # padded width
    Ti = T + 2                           # intermediate rows per tile (1-row halo)
    Mi = Ti * Wp                         # flat intermediate length
    Mo = T * Wp                          # flat output length (incl. 2 wrap cols/row)
    Mo_pad = _round_up(Mo, 128)          # lane-aligned output block
    LXT = _round_up((T + 4) * Wp + 2, 128)  # flat input slab length
    Cin_p = _round_up(Cin, 8)
    Cout_p = _round_up(Cout, 8)

    # ---- glue: layout transforms (XLA side, constant-ish) -------------------
    # Pad 2 rows top/bottom (row-tile halo) + 1 col left/right ('same' pad),
    # pad channels to a sublane multiple.
    xp = jnp.pad(x_nchw, ((0, 0), (0, Cin_p - Cin), (2, 2), (1, 1)))  # (B,Cin_p,H+4,Wp)
    slabs = jnp.stack(
        [xp[:, :, t * T: t * T + T + 4, :] for t in range(nt)], axis=1)
    xt = slabs.reshape(B, nt, Cin_p, (T + 4) * Wp)
    xt = jnp.pad(xt, ((0, 0), (0, 0), (0, 0), (0, LXT - (T + 4) * Wp)))

    # Per-tile validity mask (compile-time constant): 1 inside the image and
    # outside the 2 wrap columns, 0 on halo rows / wrap columns.
    mask_np = np.zeros((nt, 1, Mi), np.float32)
    for t in range(nt):
        for rl in range(Ti):
            g = t * T - 1 + rl           # global intermediate row
            if 0 <= g < H:
                mask_np[t, 0, rl * Wp: rl * Wp + W] = 1.0
    mask = jnp.asarray(mask_np)

    # Weights: OIHW -> (Cout_p, 9*Cin_p), tap-major (ky,kx), channel minor,
    # zero-padded channels.
    w1p = jnp.zeros((Cout_p, Cin_p, 3, 3), jnp.float32).at[:Cout, :Cin].set(w1_oihw)
    w2p = jnp.zeros((Cout_p, Cout_p, 3, 3), jnp.float32).at[:Cout, :Cout].set(w2_oihw)
    w1cat = jnp.transpose(w1p, (0, 2, 3, 1)).reshape(Cout_p, 9 * Cin_p)
    w2cat = jnp.transpose(w2p, (0, 2, 3, 1)).reshape(Cout_p, 9 * Cout_p)
    b1c = jnp.zeros((Cout_p, 1), jnp.float32).at[:Cout, 0].set(b1)
    b2c = jnp.zeros((Cout_p, 1), jnp.float32).at[:Cout, 0].set(b2)

    kernel = functools.partial(_double_conv_kernel, wp=Wp, mi=Mi, mo_pad=Mo_pad)
    out = pl.pallas_call(
        kernel,
        out_shape=jax.ShapeDtypeStruct((B, nt, Cout_p, Mo_pad), jnp.float32),
        grid=(B, nt),
        in_specs=[
            pl.BlockSpec((1, 1, Cin_p, LXT), lambda b, t: (b, t, 0, 0)),
            pl.BlockSpec((1, 1, Mi), lambda b, t: (t, 0, 0)),
            # weights / bias: constant index_map -> DMA'd once, stay resident
            pl.BlockSpec((Cout_p, 9 * Cin_p), lambda b, t: (0, 0)),
            pl.BlockSpec((Cout_p, 1), lambda b, t: (0, 0)),
            pl.BlockSpec((Cout_p, 9 * Cout_p), lambda b, t: (0, 0)),
            pl.BlockSpec((Cout_p, 1), lambda b, t: (0, 0)),
        ],
        out_specs=pl.BlockSpec((1, 1, Cout_p, Mo_pad), lambda b, t: (b, t, 0, 0)),
        compiler_params=pltpu.CompilerParams(
            dimension_semantics=("parallel", "parallel"),
            vmem_limit_bytes=32 * 1024 * 1024),
    )(xt, mask, w1cat, b1c, w2cat, b2c)

    # Drop wrap columns / channel padding and assemble NCHW.
    out = out[..., :Mo].reshape(B, nt, Cout_p, T, Wp)[..., :W]
    out = out.transpose(0, 2, 1, 3, 4).reshape(B, Cout_p, H, W)
    return out[:, :Cout]


def reference_double_conv(x_nchw, w1, b1, w2, b2):
    """Pure-JAX reference matching F.relu(conv2(F.relu(conv1(x))))."""
    dn = ("NCHW", "OIHW", "NCHW")
    y = jax.lax.conv_general_dilated(x_nchw, w1, (1, 1), "SAME",
                                     dimension_numbers=dn)
    y = jnp.maximum(y + b1[None, :, None, None], 0.0)
    y = jax.lax.conv_general_dilated(y, w2, (1, 1), "SAME",
                                     dimension_numbers=dn)
    return jnp.maximum(y + b2[None, :, None, None], 0.0)


def init_params(key, in_channels, out_channels):
    """Deterministic PyTorch-style uniform init (bound = 1/sqrt(fan_in))."""
    k1, k2, k3, k4 = jax.random.split(key, 4)
    fan1 = in_channels * 9
    fan2 = out_channels * 9
    bnd1 = 1.0 / jnp.sqrt(fan1)
    bnd2 = 1.0 / jnp.sqrt(fan2)
    w1 = jax.random.uniform(k1, (out_channels, in_channels, 3, 3),
                            jnp.float32, -bnd1, bnd1)
    b1 = jax.random.uniform(k2, (out_channels,), jnp.float32, -bnd1, bnd1)
    w2 = jax.random.uniform(k3, (out_channels, out_channels, 3, 3),
                            jnp.float32, -bnd2, bnd2)
    b2 = jax.random.uniform(k4, (out_channels,), jnp.float32, -bnd2, bnd2)
    return w1, b1, w2, b2


if __name__ == "__main__":
    B, Cin, Cout, H, W = 2, 4, 8, 16, 16
    key = jax.random.PRNGKey(0)
    kx, kp = jax.random.split(key)
    x = jax.random.normal(kx, (B, Cin, H, W), jnp.float32)
    w1, b1, w2, b2 = init_params(kp, Cin, Cout)

    y = jax.block_until_ready(double_conv(x, w1, b1, w2, b2))
    y_ref = jax.block_until_ready(reference_double_conv(x, w1, b1, w2, b2))

    assert y.shape == (B, Cout, H, W), y.shape
    assert jnp.allclose(y, y_ref, atol=1e-4, rtol=1e-4), (
        float(jnp.max(jnp.abs(y - y_ref))))

    print("KERNEL_OK")
</pallas_src>

<mosaic_0001>
module attributes {stable_mosaic.version = 11 : i64} {
  func.func @_double_conv_kernel(%arg0: i32, %arg1: i32, %arg2: memref<1x1x8x256xf32, #tpu.memory_space<vmem>>, %arg3: memref<1x1x180xf32, #tpu.memory_space<vmem>>, %arg4: memref<8x72xf32, #tpu.memory_space<vmem>>, %arg5: memref<8x1xf32, #tpu.memory_space<vmem>>, %arg6: memref<8x72xf32, #tpu.memory_space<vmem>>, %arg7: memref<8x1xf32, #tpu.memory_space<vmem>>, %arg8: memref<1x1x8x256xf32, #tpu.memory_space<vmem>>) attributes {dimension_semantics = [#tpu.dimension_semantics<parallel>, #tpu.dimension_semantics<parallel>], iteration_bounds = array<i64: 2, 2>, scalar_prefetch = 0 : i64, scratch_operands = 0 : i64, tpu.core_type = #tpu.core_type<tc>, window_params = [{transform_indices = @transform_0, window_bounds = array<i64: 1, 1, 8, 256>}, {transform_indices = @transform_1, window_bounds = array<i64: 1, 1, 180>}, {pipeline_mode = #tpu.pipeline_mode<synchronous>, transform_indices = @transform_2, window_bounds = array<i64: 8, 72>}, {pipeline_mode = #tpu.pipeline_mode<synchronous>, transform_indices = @transform_3, window_bounds = array<i64: 8, 1>}, {pipeline_mode = #tpu.pipeline_mode<synchronous>, transform_indices = @transform_4, window_bounds = array<i64: 8, 72>}, {pipeline_mode = #tpu.pipeline_mode<synchronous>, transform_indices = @transform_5, window_bounds = array<i64: 8, 1>}, {transform_indices = @transform_6, window_bounds = array<i64: 1, 1, 8, 256>}]} {
    %c0 = arith.constant 0 : index
    %c0_0 = arith.constant 0 : index
    %c0_1 = arith.constant 0 : index
    %c0_2 = arith.constant 0 : index
    %0 = vector.load %arg2[%c0, %c0_0, %c0_1, %c0_2] : memref<1x1x8x256xf32, #tpu.memory_space<vmem>>, vector<1x1x8x256xf32>
    %1 = vector.shape_cast %0 : vector<1x1x8x256xf32> to vector<8x256xf32>
    %2 = vector.extract_strided_slice %1 {offsets = [0, 0], sizes = [8, 180], strides = [1, 1]} : vector<8x256xf32> to vector<8x180xf32>
    %3 = vector.extract_strided_slice %1 {offsets = [0, 1], sizes = [8, 180], strides = [1, 1]} : vector<8x256xf32> to vector<8x180xf32>
    %4 = vector.extract_strided_slice %1 {offsets = [0, 2], sizes = [8, 180], strides = [1, 1]} : vector<8x256xf32> to vector<8x180xf32>
    %5 = vector.extract_strided_slice %1 {offsets = [0, 18], sizes = [8, 180], strides = [1, 1]} : vector<8x256xf32> to vector<8x180xf32>
    %6 = vector.extract_strided_slice %1 {offsets = [0, 19], sizes = [8, 180], strides = [1, 1]} : vector<8x256xf32> to vector<8x180xf32>
    %7 = vector.extract_strided_slice %1 {offsets = [0, 20], sizes = [8, 180], strides = [1, 1]} : vector<8x256xf32> to vector<8x180xf32>
    %8 = vector.extract_strided_slice %1 {offsets = [0, 36], sizes = [8, 180], strides = [1, 1]} : vector<8x256xf32> to vector<8x180xf32>
    %9 = vector.extract_strided_slice %1 {offsets = [0, 37], sizes = [8, 180], strides = [1, 1]} : vector<8x256xf32> to vector<8x180xf32>
    %10 = vector.extract_strided_slice %1 {offsets = [0, 38], sizes = [8, 180], strides = [1, 1]} : vector<8x256xf32> to vector<8x180xf32>
    %11 = tpu.concatenate %2, %3, %4, %5, %6, %7, %8, %9, %10 in 0 : vector<8x180xf32>, vector<8x180xf32>, vector<8x180xf32>, vector<8x180xf32>, vector<8x180xf32>, vector<8x180xf32>, vector<8x180xf32>, vector<8x180xf32>, vector<8x180xf32> -> vector<72x180xf32>
    %c0_3 = arith.constant 0 : index
    %c0_4 = arith.constant 0 : index
    %12 = vector.load %arg4[%c0_3, %c0_4] : memref<8x72xf32, #tpu.memory_space<vmem>>, vector<8x72xf32>
    %cst = arith.constant dense<0.000000e+00> : vector<8x180xf32>
    %13 = tpu.matmul %12, %11, %cst {dimension_numbers = #tpu.dot_dimension_numbers<[1], [0], [0], [1], [0, 0, 1, 1], [], []>} : vector<8x72xf32>, vector<72x180xf32>, vector<8x180xf32> -> vector<8x180xf32>
    %c0_5 = arith.constant 0 : index
    %c0_6 = arith.constant 0 : index
    %14 = vector.load %arg5[%c0_5, %c0_6] : memref<8x1xf32, #tpu.memory_space<vmem>>, vector<8x1xf32>
    %15 = vector.broadcast %14 : vector<8x1xf32> to vector<8x180xf32>
    %16 = arith.addf %13, %15 : vector<8x180xf32>
    %cst_7 = arith.constant 0.000000e+00 : f32
    %17 = vector.broadcast %cst_7 : f32 to vector<8x180xf32>
    %18 = arith.maximumf %16, %17 : vector<8x180xf32>
    %c0_8 = arith.constant 0 : index
    %c0_9 = arith.constant 0 : index
    %c0_10 = arith.constant 0 : index
    %19 = vector.load %arg3[%c0_8, %c0_9, %c0_10] : memref<1x1x180xf32, #tpu.memory_space<vmem>>, vector<1x1x180xf32>
    %20 = vector.shape_cast %19 : vector<1x1x180xf32> to vector<1x180xf32>
    %21 = vector.broadcast %20 : vector<1x180xf32> to vector<8x180xf32>
    %22 = arith.mulf %18, %21 : vector<8x180xf32>
    %cst_11 = arith.constant 0.000000e+00 : f32
    %23 = vector.broadcast %cst_11 : f32 to vector<8x1xf32>
    %cst_12 = arith.constant 0.000000e+00 : f32
    %24 = vector.broadcast %cst_12 : f32 to vector<8x113xf32>
    %25 = tpu.concatenate %23, %22, %24 in 1 : vector<8x1xf32>, vector<8x180xf32>, vector<8x113xf32> -> vector<8x294xf32>
    %26 = vector.extract_strided_slice %25 {offsets = [0, 0], sizes = [8, 256], strides = [1, 1]} : vector<8x294xf32> to vector<8x256xf32>
    %27 = vector.extract_strided_slice %25 {offsets = [0, 1], sizes = [8, 256], strides = [1, 1]} : vector<8x294xf32> to vector<8x256xf32>
    %28 = vector.extract_strided_slice %25 {offsets = [0, 2], sizes = [8, 256], strides = [1, 1]} : vector<8x294xf32> to vector<8x256xf32>
    %29 = vector.extract_strided_slice %25 {offsets = [0, 18], sizes = [8, 256], strides = [1, 1]} : vector<8x294xf32> to vector<8x256xf32>
    %30 = vector.extract_strided_slice %25 {offsets = [0, 19], sizes = [8, 256], strides = [1, 1]} : vector<8x294xf32> to vector<8x256xf32>
    %31 = vector.extract_strided_slice %25 {offsets = [0, 20], sizes = [8, 256], strides = [1, 1]} : vector<8x294xf32> to vector<8x256xf32>
    %32 = vector.extract_strided_slice %25 {offsets = [0, 36], sizes = [8, 256], strides = [1, 1]} : vector<8x294xf32> to vector<8x256xf32>
    %33 = vector.extract_strided_slice %25 {offsets = [0, 37], sizes = [8, 256], strides = [1, 1]} : vector<8x294xf32> to vector<8x256xf32>
    %34 = vector.extract_strided_slice %25 {offsets = [0, 38], sizes = [8, 256], strides = [1, 1]} : vector<8x294xf32> to vector<8x256xf32>
    %35 = tpu.concatenate %26, %27, %28, %29, %30, %31, %32, %33, %34 in 0 : vector<8x256xf32>, vector<8x256xf32>, vector<8x256xf32>, vector<8x256xf32>, vector<8x256xf32>, vector<8x256xf32>, vector<8x256xf32>, vector<8x256xf32>, vector<8x256xf32> -> vector<72x256xf32>
    %c0_13 = arith.constant 0 : index
    %c0_14 = arith.constant 0 : index
    %36 = vector.load %arg6[%c0_13, %c0_14] : memref<8x72xf32, #tpu.memory_space<vmem>>, vector<8x72xf32>
    %cst_15 = arith.constant dense<0.000000e+00> : vector<8x256xf32>
    %37 = tpu.matmul %36, %35, %cst_15 {dimension_numbers = #tpu.dot_dimension_numbers<[1], [0], [0], [1], [0, 0, 1, 1], [], []>} : vector<8x72xf32>, vector<72x256xf32>, vector<8x256xf32> -> vector<8x256xf32>
    %c0_16 = arith.constant 0 : index
    %c0_17 = arith.constant 0 : index
    %38 = vector.load %arg7[%c0_16, %c0_17] : memref<8x1xf32, #tpu.memory_space<vmem>>, vector<8x1xf32>
    %39 = vector.broadcast %38 : vector<8x1xf32> to vector<8x256xf32>
    %40 = arith.addf %37, %39 : vector<8x256xf32>
    %cst_18 = arith.constant 0.000000e+00 : f32
    %41 = vector.broadcast %cst_18 : f32 to vector<8x256xf32>
    %42 = arith.maximumf %40, %41 : vector<8x256xf32>
    %c0_19 = arith.constant 0 : index
    %c0_20 = arith.constant 0 : index
    %c0_21 = arith.constant 0 : index
    %c0_22 = arith.constant 0 : index
    %43 = vector.load %arg8[%c0_19, %c0_20, %c0_21, %c0_22] : memref<1x1x8x256xf32, #tpu.memory_space<vmem>>, vector<1x1x8x256xf32>
    %44 = vector.shape_cast %43 : vector<1x1x8x256xf32> to vector<8x256xf32>
    %45 = vector.shape_cast %42 : vector<8x256xf32> to vector<1x1x8x256xf32>
    tpu.vector_store %arg8[%c0_19, %c0_20, %c0_21, %c0_22], %45 {strides = array<i32>} : memref<1x1x8x256xf32, #tpu.memory_space<vmem>>, vector<1x1x8x256xf32>,
    return
  }
  func.func @transform_0(%arg0: i32, %arg1: i32) -> (i32, i32, i32, i32) {
    %c0_i32 = arith.constant 0 : i32
    %c0_i32_0 = arith.constant 0 : i32
    %c0_i32_1 = arith.constant 0 : i32
    return %arg0, %arg1, %c0_i32, %c0_i32_0 : i32, i32, i32, i32
  }
  func.func @transform_1(%arg0: i32, %arg1: i32) -> (i32, i32, i32) {
    %c0_i32 = arith.constant 0 : i32
    %c0_i32_0 = arith.constant 0 : i32
    %c0_i32_1 = arith.constant 0 : i32
    return %arg1, %c0_i32, %c0_i32_0 : i32, i32, i32
  }
  func.func @transform_2(%arg0: i32, %arg1: i32) -> (i32, i32) {
    %c0_i32 = arith.constant 0 : i32
    %c0_i32_0 = arith.constant 0 : i32
    %c0_i32_1 = arith.constant 0 : i32
    return %c0_i32, %c0_i32_0 : i32, i32
  }
  func.func @transform_3(%arg0: i32, %arg1: i32) -> (i32, i32) {
    %c0_i32 = arith.constant 0 : i32
    %c0_i32_0 = arith.constant 0 : i32
    %c0_i32_1 = arith.constant 0 : i32
    return %c0_i32, %c0_i32_0 : i32, i32
  }
  func.func @transform_4(%arg0: i32, %arg1: i32) -> (i32, i32) {
    %c0_i32 = arith.constant 0 : i32
    %c0_i32_0 = arith.constant 0 : i32
    %c0_i32_1 = arith.constant 0 : i32
    return %c0_i32, %c0_i32_0 : i32, i32
  }
  func.func @transform_5(%arg0: i32, %arg1: i32) -> (i32, i32) {
    %c0_i32 = arith.constant 0 : i32
    %c0_i32_0 = arith.constant 0 : i32
    %c0_i32_1 = arith.constant 0 : i32
    return %c0_i32, %c0_i32_0 : i32, i32
  }
  func.func @transform_6(%arg0: i32, %arg1: i32) -> (i32, i32, i32, i32) {
    %c0_i32 = arith.constant 0 : i32
    %c0_i32_0 = arith.constant 0 : i32
    %c0_i32_1 = arith.constant 0 : i32
    return %arg0, %arg1, %c0_i32, %c0_i32_0 : i32, i32, i32, i32
  }
}

</mosaic_0001>

<bundles_post_ra>
// kernel: double_conv.1
= control target key start
LH: loop header
LB: loop body
LE: loop exit
PB: predicated region body
PF: predicated region fallthrough
CT: control target
= control target key end

     0   :  { %s916_s21 = smov 0   ;;  %s918_s22 = smov 0   ;;  %s1108_s0 = inlined_call_operand.vmem [shape: f32[2,2,8,256], index: 0, kind: input, shape index: {}]   ;;  %s1109_s1 = inlined_call_operand.vmem [shape: f32[2,1,180], index: 1, kind: input, shape index: {}]   ;;  %s1110_s2 = inlined_call_operand.vmem [shape: f32[8,72], index: 2, kind: input, shape index: {}]   ;;  %s1111_s3 = inlined_call_operand.vmem [shape: f32[8,1], index: 3, kind: input, shape index: {}]   ;;  %s1112_s4 = inlined_call_operand.vmem [shape: f32[8,72], index: 4, kind: input, shape index: {}]   ;;  %s1113_s5 = inlined_call_operand.vmem [shape: f32[8,1], index: 5, kind: input, shape index: {}]   ;;  %s1114_s6 = inlined_call_operand.vmem [shape: f32[2,2,8,256], index: 6, kind: output, shape index: {}]  }
   0x1   :  { %s920_s23 = smov 0   ;;  %s922_s24 = smov 0  }
   0x2   :  { %s924_s25 = smov 0  }
   0x3 LB: > { %s25_s26 = sadd.s32 1, %s860_s23  ;;  %s28_s27 = sadd.s32 1, %s864_s24  ;;  %s868_s25 = sphi %s924_s25, %s16_s25   ;;  %s864_s24 = sphi %s922_s24, %s1118_s24   ;;  %s860_s23 = sphi %s920_s23, %s1117_s23   ;;  %s856_s22 = sphi %s918_s22, %s1116_s22   ;;  %s852_s21 = sphi %s916_s21, %s1115_s21  }
   0x4   : > { %p26_p0 = scmp.ge.s32.totalorder %s25_s26, 2  ;;  %p763_p1 = scmp.ge.s32.totalorder %s868_s25, 1 }
   0x5   : > { %p241_p2 = scmp.lt.s32.totalorder %s868_s25, 5 }
   0x6   : > { %s1120_s26 = smov (%p26_p0, %s25_s26), 0  ;;  %s1122_s27 = smov (!%p26_p0, %s28_s27), %s864_s24 }
   0x7   : > { %p242_p3 = pnand %p763_p1, %p241_p2  ;;  %p30_p4 = scmp.ge.s32.totalorder %s1122_s27, 2 }
   0x8   : > { %p283_p5 = scmp.lt.s32.totalorder (!%p242_p3), %s856_s22, 1  ;;  %p285_p6 = scmp.lt.s32.totalorder (!%p242_p3), %s852_s21, 1 }
   0x9   : > { %s1124_s27 = smov (%p30_p4, %s1122_s27), 0  ;;  %245 = sbr.rel (%p242_p3) target bundleno = 834 (0x342), region = 44 }
   0xa   : > { %s870_s11 = smov (!%p242_p3), 91   ;;  %s871_s12 = smov (!%p242_p3), 90  }
   0xb   : > { %s872_s13 = smov (!%p242_p3), 92   ;;  %s873_s14 = smov (!%p242_p3), 108  }
   0xc   : > { %s874_s15 = smov (!%p242_p3), 109   ;;  %s876_s16 = smov (!%p242_p3), 110  }
   0xd   : > { %s878_s17 = smov (!%p242_p3), 126   ;;  %s879_s18 = smov (!%p242_p3), 127  }
   0xe   : > { %s1126_s22 = smov (!%p283_p5, %s856_s22), 1  ;;  %s1128_s21 = smov (!%p285_p6, %s852_s21), 1  ;;  %v875_v2 = vmov 0.0   ;;  %v877_v3 = vmov 0   ;;  %v374_v4 = vld [vmem:[%s1111_s3] sm:$0xff]  ;;  %vm369_vm0 = vcmask 736256   ;;  %v459_v30 = vlaneseq }
   0xf   : > { %s765_s28 = sshll.u32 %s1126_s22, 2  ;;  %s764_s29 = sshll.u32 %s1128_s21, 1  ;;  %448 = vmatprep.mubr.f32.mxu0 %v875_v2  ;;  %641 = vmatprep.mubr.f32.mxu1 %v875_v2  ;;  %vm361_vm1 = vcmask 744448   ;;  %vm353_vm2 = vcmask 752640   ;;  %vm345_vm3 = vcmask 883712   ;;  %vm337_vm4 = vcmask 891904  }
  0x10   : > { %s951_s30 = sadd.s32 %s765_s28, %s764_s29  ;;  %829 = vset.pattern.permute.xlu0 %v877_v3  ;;  %vm329_vm5 = vcmask 900096   ;;  %vm321_vm6 = vcmask 1031168   ;;  %vm313_vm7 = vcmask 1039360   ;;  %v373_v29 = vld [vmem:[%s1110_s2] sm:$0xff]  ;;  %vm380_vm8 = vcmask 588800   ;;  %s880_s19 = smov 1  }
  0x11   : > { %s766_s7 = sshll.u32 %s951_s30, 3  ;;  %v460_v31 = vshrl.u32 %v459_v30, 7  ;;  %vm477_vm9 = vcmask 7168   ;;  %vm482_vm10 = vcmask 433152   ;;  %v568_v51 = vld [vmem:[%s1113_s5] sm:$0xff] }
  0x12   : > { %s291_s10 = scalar_lea.vmem %s1108_s0, %s766_s7  ;;  %vm773_vm11 = vmneg %vm477_vm9 }
  0x13   : > { %v959_v0 = vld [vmem:[%s291_s10] sm:$0xff]  ;;  %v965_v1 = vld [vmem:[%s291_s10 + $0x8] sm:$0xff]  ;;  %s295_s10 = scalar_lea.vmem %s1109_s1, %s764_s29  ;;  %v461_v32 = vsub.s32 0, %v460_v31  ;;  %v465_v37 = vsub.s32 1, %v460_v31 }
  0x14   : > { %357 = vrot.lane.b32.xlu1 %v959_v0, %s870_s11  ;;  %365 = vrot.lane.b32.xlu0 %v959_v0, %s871_s12  ;;  %v457_v34 = vld [vmem:[%s295_s10] sm:$0x3] }
  0x15   : > { %v462_v38 = vrot.slane %v457_v34, %v461_v32  ;;  %v466_v43 = vrot.slane %v457_v34, %v465_v37 }
  0x18   : > { %359 = vrot.lane.b32.xlu1 %v965_v1, %s870_s11  ;;  %367 = vrot.lane.b32.xlu0 %v965_v1, %s871_s12 }
  0x1c   : > { %351 = vrot.lane.b32.xlu1 %v965_v1, %s872_s13  ;;  %349 = vrot.lane.b32.xlu0 %v959_v0, %s872_s13 }
  0x20   : > { %343 = vrot.lane.b32.xlu1 %v965_v1, %s873_s14  ;;  %341 = vrot.lane.b32.xlu0 %v959_v0, %s873_s14 }
  0x24   : > { %335 = vrot.lane.b32.xlu1 %v965_v1, %s874_s15  ;;  %333 = vrot.lane.b32.xlu0 %v959_v0, %s874_s15 }
  0x28   : > { %327 = vrot.lane.b32.xlu1 %v965_v1, %s876_s16  ;;  %325 = vrot.lane.b32.xlu0 %v959_v0, %s876_s16 }
  0x2c   : > { %319 = vrot.lane.b32.xlu1 %v965_v1, %s878_s17  ;;  %317 = vrot.lane.b32.xlu0 %v959_v0, %s878_s17 }
  0x30   : > { %311 = vrot.lane.b32.xlu1 %v965_v1, %s879_s18  ;;  %309 = vrot.lane.b32.xlu0 %v959_v0, %s879_s18 }
  0x34   : > { %377 = vperm.xlu0 %829, %v374_v4  }
  0x38   : > { %551 = vrot.lane.b32.xlu0 %v875_v2, %s870_s11 }
  0x3c   : > { %531 = vrot.lane.b32.xlu0 %v875_v2, %s873_s14 }
  0x40   : > { %511 = vrot.lane.b32.xlu0 %v875_v2, %s876_s16 }
  0x86   : > { %v358_v5 = vpop.permute.xlu1 %357  ;;  %v366_v6 = vpop.permute.xlu0 %365 }
  0x8a   : > { %v360_v7 = vpop.permute.xlu1 %359  ;;  %v368_v8 = vpop.permute.xlu0 %367 }
  0x8b   : > { %398 = vmatprep.subr.mxu0 %v368_v8  ;;  %v370_v9 = vsel %vm369_vm0, %v366_v6, %v368_v8  ;;  %v362_v10 = vsel %vm361_vm1, %v358_v5, %v360_v7 }
  0x8c   : > { %399 = vmatpush1.msra.mxu0 %v370_v9 }
  0x8d   : > { %400 = vmatprep.subr.mxu0 %v360_v7 }
  0x8e   : > { %v352_v11 = vpop.permute.xlu1 %351  ;;  %401 = vmatpush1.msra.mxu0 %v362_v10  ;;  %v350_v12 = vpop.permute.xlu0 %349 }
  0x8f   : > { %402 = vmatprep.subr.mxu0 %v352_v11  ;;  %v354_v13 = vsel %vm353_vm2, %v350_v12, %v352_v11 }
  0x90   : > { %403 = vmatpush1.msra.mxu0 %v354_v13 }
  0x92   : > { %v344_v14 = vpop.permute.xlu1 %343  ;;  %v342_v15 = vpop.permute.xlu0 %341 }
  0x93   : > { %404 = vmatprep.subr.mxu0 %v344_v14  ;;  %v346_v16 = vsel %vm345_vm3, %v342_v15, %v344_v14 }
  0x94   : > { %405 = vmatpush1.msra.mxu0 %v346_v16 }
  0x96   : > { %v336_v17 = vpop.permute.xlu1 %335  ;;  %v334_v18 = vpop.permute.xlu0 %333 }
  0x97   : > { %406 = vmatprep.subr.mxu0 %v336_v17  ;;  %v338_v19 = vsel %vm337_vm4, %v334_v18, %v336_v17 }
  0x98   : > { %407 = vmatpush1.msra.mxu0 %v338_v19 }
  0x9a   : > { %v328_v20 = vpop.permute.xlu1 %327  ;;  %v326_v21 = vpop.permute.xlu0 %325 }
  0x9b   : > { %408 = vmatprep.subr.mxu0 %v328_v20  ;;  %v330_v22 = vsel %vm329_vm5, %v326_v21, %v328_v20 }
  0x9c   : > { %409 = vmatpush1.msra.mxu0 %v330_v22 }
  0x9e   : > { %v320_v23 = vpop.permute.xlu1 %319  ;;  %v318_v24 = vpop.permute.xlu0 %317 }
  0x9f   : > { %410 = vmatprep.subr.mxu0 %v320_v23  ;;  %v322_v25 = vsel %vm321_vm6, %v318_v24, %v320_v23 }
  0xa0   : > { %411 = vmatpush1.msra.mxu0 %v322_v25 }
  0xa2   : > { %v312_v26 = vpop.permute.xlu1 %311  ;;  %v310_v27 = vpop.permute.xlu0 %309 }
  0xa3   : > { %412 = vmatprep.subr.mxu0 %v312_v26  ;;  %v314_v28 = vsel %vm313_vm7, %v310_v27, %v312_v26 }
  0xa4   : > { %413 = vmatpush1.msra.mxu0 %v314_v28  ;;  %v567_v28 = vld [vmem:[%s1112_s4] sm:$0xff] }
  0xa5   : > { %414 = vmatprep.subr.mxu0 %v965_v1 }
  0xa6   : > { %415 = vmatpush1.msra.mxu0 %v959_v0 }
  0xa7   : > { %771 = vmatmul.mubr.msk.f32.vlgmr.msra.gmra.mxu0 %vm380_vm8, %v373_v29 }
  0xaf   : > { %v378_v33 = vpop.permute.xlu0 %377 }
  0xb3   : > { %v552_v54 = vpop.permute.xlu0 %551 }
  0xb7   : > { %v532_v56 = vpop.permute.xlu0 %531 }
  0xbb   : > { %v512_v58 = vpop.permute.xlu0 %511 }
 0x167   : > { %v450_v35 = vpop.f32.mrf.mxu0 }
 0x168   : > { %v451_v36 = vadd.f32 %v450_v35, %v378_v33 }
 0x169   : > { %v452_v39 = vpop.f32.mrf.mxu0 }
 0x16a   : > { %v455_v40 = vmax.f32 %v451_v36, 0.0  ;;  %v453_v41 = vadd.f32 %v452_v39, %v378_v33 }
 0x16c   : > { %v456_v42 = vmax.f32 %v453_v41, 0.0  ;;  %v469_v44 = vmul.f32 %v462_v38, %v455_v40 }
 0x16e   : > { %473 = vrot.lane.b32.xlu1 %v469_v44, %s880_s19  ;;  %v470_v45 = vmul.f32 %v466_v43, %v456_v42 }
 0x172   : > { %475 = vrot.lane.b32.xlu1 %v470_v45, %s880_s19 }
 0x176   : > { %561 = vrot.lane.b32.xlu1 %v875_v2, %s871_s12 }
 0x17a   : > { %541 = vrot.lane.b32.xlu1 %v875_v2, %s872_s13 }
 0x17e   : > { %521 = vrot.lane.b32.xlu1 %v875_v2, %s874_s15 }
 0x182   : > { %501 = vrot.lane.b32.xlu1 %v875_v2, %s878_s17 }
 0x1e0   : > { %v1033_v46 = vpop.permute.xlu1 %473 }
 0x1e1   : > { %v481_v47 = vsel %vm477_vm9, 0.0, %v1033_v46 }
 0x1e2   : > { %547 = vrot.lane.b32.xlu1 %v481_v47, %s870_s11  ;;  %557 = vrot.lane.b32.xlu0 %v481_v47, %s871_s12 }
 0x1e4   : > { %v476_v48 = vpop.permute.xlu1 %475 }
 0x1e5   : > { %v1043_v49 = vsel %vm477_vm9, %v1033_v46, %v476_v48 }
 0x1e6   : > { %527 = vrot.lane.b32.xlu1 %v481_v47, %s873_s14  ;;  %537 = vrot.lane.b32.xlu0 %v481_v47, %s872_s13  ;;  %v483_v50 = vsel %vm482_vm10, %v1043_v49, 0.0 }
 0x1e8   : > { %v562_v52 = vpop.permute.xlu1 %561 }
 0x1ea   : > { %507 = vrot.lane.b32.xlu1 %v481_v47, %s876_s16  ;;  %517 = vrot.lane.b32.xlu0 %v481_v47, %s874_s15 }
 0x1ec   : > { %v542_v53 = vpop.permute.xlu1 %541 }
 0x1ee   : > { %497 = vrot.lane.b32.xlu0 %v481_v47, %s878_s17  ;;  %549 = vrot.lane.b32.xlu1 %v483_v50, %s870_s11 }
 0x1f0   : > { %v522_v55 = vpop.permute.xlu1 %521 }
 0x1f2   : > { %529 = vrot.lane.b32.xlu1 %v483_v50, %s873_s14  ;;  %559 = vrot.lane.b32.xlu0 %v483_v50, %s871_s12 }
 0x1f4   : > { %v502_v57 = vpop.permute.xlu1 %501 }
 0x1f6   : > { %509 = vrot.lane.b32.xlu1 %v483_v50, %s876_s16  ;;  %539 = vrot.lane.b32.xlu0 %v483_v50, %s872_s13 }
 0x1fa   : > { %489 = vrot.lane.b32.xlu1 %v483_v50, %s879_s18  ;;  %519 = vrot.lane.b32.xlu0 %v483_v50, %s874_s15  ;;  %s304_s15 = scalar_lea.vmem %s1114_s6, %s766_s7 }
 0x1fe   : > { %487 = vrot.lane.b32.xlu1 %v481_v47, %s879_s18  ;;  %499 = vrot.lane.b32.xlu0 %v483_v50, %s878_s17 }
 0x202   : > { %491 = vrot.lane.b32.xlu0 %v875_v2, %s879_s18 }
 0x206   : > { %571 = vperm.xlu0 %829, %v568_v51  }
 0x254   : > { %v548_v59 = vpop.permute.xlu1 %547  ;;  %v558_v60 = vpop.permute.xlu0 %557 }
 0x258   : > { %v528_v61 = vpop.permute.xlu1 %527  ;;  %v538_v62 = vpop.permute.xlu0 %537 }
 0x25c   : > { %v508_v63 = vpop.permute.xlu1 %507  ;;  %v518_v0 = vpop.permute.xlu0 %517 }
 0x260   : > { %v550_v1 = vpop.permute.xlu1 %549  ;;  %v498_v2 = vpop.permute.xlu0 %497 }
 0x261   : > { %v554_v7 = vsel %vm361_vm1, %v550_v1, %v552_v54  ;;  %v553_v10 = vsel %vm361_vm1, %v548_v59, %v550_v1 }
 0x264   : > { %v530_v3 = vpop.permute.xlu1 %529  ;;  %v560_v4 = vpop.permute.xlu0 %559 }
 0x265   : > { %v564_v5 = vsel %vm369_vm0, %v560_v4, %v562_v52  ;;  %v563_v6 = vsel %vm369_vm0, %v558_v60, %v560_v4  ;;  %v534_v13 = vsel %vm345_vm3, %v530_v3, %v532_v56  ;;  %v533_v15 = vsel %vm345_vm3, %v528_v61, %v530_v3 }
 0x266   : > { %591 = vmatprep.subr.mxu1 %v564_v5 }
 0x267   : > { %592 = vmatpush1.msra.mxu1 %v563_v6 }
 0x268   : > { %v510_v8 = vpop.permute.xlu1 %509  ;;  %593 = vmatprep.subr.mxu1 %v554_v7  ;;  %v540_v9 = vpop.permute.xlu0 %539 }
 0x269   : > { %594 = vmatpush1.msra.mxu1 %v553_v10  ;;  %v544_v11 = vsel %vm353_vm2, %v540_v9, %v542_v53  ;;  %v543_v12 = vsel %vm353_vm2, %v538_v62, %v540_v9  ;;  %v514_v19 = vsel %vm329_vm5, %v510_v8, %v512_v58  ;;  %v513_v21 = vsel %vm329_vm5, %v508_v63, %v510_v8 }
 0x26a   : > { %595 = vmatprep.subr.mxu1 %v544_v11 }
 0x26b   : > { %596 = vmatpush1.msra.mxu1 %v543_v12 }
 0x26c   : > { %597 = vmatprep.subr.mxu1 %v534_v13  ;;  %v520_v14 = vpop.permute.xlu0 %519  ;;  %v490_v16 = vpop.permute.xlu1 %489 }
 0x26d   : > { %598 = vmatpush1.msra.mxu1 %v533_v15  ;;  %v524_v17 = vsel %vm337_vm4, %v520_v14, %v522_v55  ;;  %v523_v18 = vsel %vm337_vm4, %v518_v0, %v520_v14 }
 0x26e   : > { %599 = vmatprep.subr.mxu1 %v524_v17 }
 0x26f   : > { %600 = vmatpush1.msra.mxu1 %v523_v18 }
 0x270   : > { %601 = vmatprep.subr.mxu1 %v514_v19  ;;  %v500_v20 = vpop.permute.xlu0 %499  ;;  %v488_v24 = vpop.permute.xlu1 %487 }
 0x271   : > { %602 = vmatpush1.msra.mxu1 %v513_v21  ;;  %v504_v22 = vsel %vm321_vm6, %v500_v20, %v502_v57  ;;  %v503_v23 = vsel %vm321_vm6, %v498_v2, %v500_v20  ;;  %v493_v27 = vsel %vm313_vm7, %v488_v24, %v490_v16 }
 0x272   : > { %603 = vmatprep.subr.mxu1 %v504_v22 }
 0x273   : > { %604 = vmatpush1.msra.mxu1 %v503_v23 }
 0x274   : > { %v492_v25 = vpop.permute.xlu0 %491 }
 0x275   : > { %v494_v26 = vsel %vm313_vm7, %v490_v16, %v492_v25 }
 0x276   : > { %605 = vmatprep.subr.mxu1 %v494_v26 }
 0x277   : > { %606 = vmatpush1.msra.mxu1 %v493_v27 }
 0x278   : > { %772 = vmatprep.subr.msk.mxu1 %vm482_vm10, %v1043_v49 }
 0x279   : > { %774 = vmatpush1.msk.msra.mxu1 %vm773_vm11, %v1033_v46 }
 0x27a   : > { %775 = vmatmul.mubr.msk.f32.vlgmr.msra.gmra.mxu1 %vm380_vm8, %v567_v28 }
 0x281   : > { %v572_v29 = vpop.permute.xlu0 %571 }
 0x33a   : > { %v643_v30 = vpop.f32.mrf.mxu1 }
 0x33b   : > { %v644_v31 = vadd.f32 %v643_v30, %v572_v29 }
 0x33c   : > { %v645_v32 = vpop.f32.mrf.mxu1 }
 0x33d   : > { %v648_v33 = vmax.f32 %v644_v31, 0.0  ;;  %v646_v34 = vadd.f32 %v645_v32, %v572_v29 }
 0x33f   : > { %650 = vst [vmem:[%s304_s15] sm:$0xff] %v648_v33  ;;  %v649_v35 = vmax.f32 %v646_v34, 0.0 }
 0x341   : > { %651 = vst [vmem:[%s304_s15 + $0x8] sm:$0xff] %v649_v35 }
 0x342 PF: > { %s16_s25 = sadd.s32 1, %s868_s25   ;;  %s1115_s21 = smov %s860_s23 }
 0x343   : > { %p13_p7 = scmp.ge.s32.totalorder %s16_s25, 6   ;;  %s1116_s22 = smov %s864_s24 }
 0x344   : > { %s1117_s23 = smov %s1120_s26  ;;  %s1118_s24 = smov %s1124_s27 }
 0x345   :  { %15 = sbr.rel (!%p13_p7) target bundleno = 3 (0x3), region = 77 }

</bundles_post_ra>
